<compile_context>
chip_gen: v6e
topology: v6e:2x2x1
jax: 0.10.0
libtpu: 0.0.40
codegen_flags: <defaults>
</compile_context>

<pallas_src>
import functools

import jax
import jax.numpy as jnp
from jax.experimental import pallas as pl
from jax.experimental.pallas import tpu as pltpu  # noqa: F401  (kept for TPU backend)

CONFIG = dict(coverage=True, pgn=True, emb_dim=32, hid_dim=32,
              sum_vocab=64, n_layers=1)


def _round_up(x, m):
    return ((x + m - 1) // m) * m


# ------------------------- fused decoder kernel -------------------------

def _fused_decoder_kernel(
        # per-step data
        ct1_ref,       # (B, 2H)   c_t_1
        yemb_ref,      # (B, E)    embedding(y_t_1)
        h0_ref,        # (B, H)
        c0_ref,        # (B, H)
        enc_out_ref,   # (B, T, 2H)
        enc_feat_ref,  # (B, T, 2H)
        mask_ref,      # (B, T)
        cov_ref,       # (B, T)
        enc_ids_ref,   # (B, T) int32 (zeros when has_ext=False)
        # packed weights
        wgx_ref,       # (2H+E+H, 4H+1) bf16: [x_context∘W_ih ; W_hh] | p_gen(x) col
        wdec_ref,      # (2H, 2H) bf16      decode_proj
        whead_ref,     # (4H, Vp+1) bf16    fused out1@out2 logits | p_gen(z) col
        bias_ref,      # (8, 128) f32       bias / small-vector slab
        # outputs
        final_ref,     # (B, Wout)  padded final distribution (lane-dense)
        misc_ref,      # (B, Mpad)  packed [h, c, c_t, attn, coverage, p_gen]
        *, H, E, T, Vp, Wout, do_step0, do_cov_update, has_ext):

    f32, bf16 = jnp.float32, jnp.bfloat16
    B = h0_ref.shape[0]

    bias = bias_ref[...]                       # one vreg
    b_gates = bias[0:1, :4 * H]
    b_dec = bias[1:2, :2 * H]
    w_c_b = bias[2:3, :2 * H][:, None, :]      # (1,1,2H)  hoisted broadcast
    v_b = bias[3:4, :2 * H][:, None, :]        # (1,1,2H)  hoisted broadcast
    b_pg = bias[4:5, 0:1]                      # (1,1)
    b_logit = bias[5:6, :Vp]                   # (1,Vp)  (-1e30 on pad lanes)

    enc_out = enc_out_ref[...]
    enc_feat = enc_feat_ref[...]
    mask = mask_ref[...]
    cov = cov_ref[...]

    def attn_dist_of(h_part, c_part, coverage):
        # decode_proj(s_t_hat) fed as two sub-dots of the packed weight
        dec_fea = (jnp.dot(h_part.astype(bf16), wdec_ref[0:H, :],
                           preferred_element_type=f32)
                   + jnp.dot(c_part.astype(bf16), wdec_ref[H:2 * H, :],
                             preferred_element_type=f32)
                   + b_dec)                                            # (B,2H)
        att = enc_feat + dec_fea[:, None, :] + coverage[:, :, None] * w_c_b
        e = jnp.tanh(att)
        scores = jnp.sum(e * v_b, axis=-1)                             # (B,T)
        m = jnp.max(scores, axis=-1, keepdims=True)
        ex = jnp.exp(scores - m)
        soft = ex * pl.reciprocal(jnp.sum(ex, axis=-1, keepdims=True),
                                  approx=True)
        attn_ = soft * mask
        return attn_ * pl.reciprocal(jnp.sum(attn_, axis=-1, keepdims=True),
                                     approx=True)

    ct1 = ct1_ref[...]
    yemb = yemb_ref[...]
    h0 = h0_ref[...]
    c0 = c0_ref[...]

    if do_step0:
        # inference step 0: refresh coverage only; the reference discards c_t,
        # so the bmm is skipped entirely.
        cov = cov + attn_dist_of(h0, c0, cov)

    # LSTM gates + p_gen(x) from one packed weight (x_context folded at pack
    # time); the K = 2H+E+H operand is fed as three per-block sub-dots.
    ga = (jnp.dot(ct1.astype(bf16), wgx_ref[0:2 * H, :],
                  preferred_element_type=f32)
          + jnp.dot(yemb.astype(bf16), wgx_ref[2 * H:2 * H + E, :],
                    preferred_element_type=f32)
          + jnp.dot(h0.astype(bf16), wgx_ref[2 * H + E:2 * H + E + H, :],
                    preferred_element_type=f32))                       # (B,4H+1)
    gates = ga[:, 0:4 * H] + b_gates
    pgen_x = ga[:, 4 * H:4 * H + 1]                                    # (B,1)

    i_g = jax.nn.sigmoid(gates[:, 0:H])
    f_g = jax.nn.sigmoid(gates[:, H:2 * H])
    g_g = jnp.tanh(gates[:, 2 * H:3 * H])
    o_g = jax.nn.sigmoid(gates[:, 3 * H:4 * H])
    c_new = f_g * c0 + i_g * g_g
    h_new = o_g * jnp.tanh(c_new)

    attn = attn_dist_of(h_new, c_new, cov)
    # c_t = bmm(attn, enc_out): VPU multiply + sublane reduce (T is tiny)
    c_t = jnp.sum(attn[:, :, None] * enc_out, axis=1)                  # (B,2H)
    cov_out = (cov + attn) if do_cov_update else cov

    # fused out1->out2 logits + p_gen(z) head over z = [h_new, c_new, c_t]
    hr = (jnp.dot(h_new.astype(bf16), whead_ref[0:H, :],
                  preferred_element_type=f32)
          + jnp.dot(c_new.astype(bf16), whead_ref[H:2 * H, :],
                    preferred_element_type=f32)
          + jnp.dot(c_t.astype(bf16), whead_ref[2 * H:4 * H, :],
                    preferred_element_type=f32))                       # (B,Vp+1)
    logits = hr[:, 0:Vp] + b_logit          # pad lanes get -1e30 -> softmax 0
    p_gen = jax.nn.sigmoid(hr[:, Vp:Vp + 1] + pgen_x + b_pg)           # (B,1)

    lm = jnp.max(logits, axis=-1, keepdims=True)
    lex = jnp.exp(logits - lm)
    vocab_dist = lex * pl.reciprocal(jnp.sum(lex, axis=-1, keepdims=True),
                                     approx=True)                      # (B,Vp)

    if has_ext:
        ad = (1.0 - p_gen) * attn                                      # (B,T)
        vd = p_gen * vocab_dist                                        # (B,Vp)
        ids = enc_ids_ref[...]
        lane = jax.lax.broadcasted_iota(jnp.int32, (B, Wout), 1)
        ptr = jnp.zeros((B, Wout), f32)
        for t in range(T):   # static unroll: VPU scatter-add, no one-hot tensor
            ptr = ptr + jnp.where(ids[:, t:t + 1] == lane, ad[:, t:t + 1], 0.0)
        if Wout == Vp:
            final_ref[...] = vd + ptr                   # one lane-dense store
        else:
            final_ref[:, 0:Vp] = vd + ptr[:, 0:Vp]      # lane-tile aligned stores
            final_ref[:, Vp:] = ptr[:, Vp:]
    else:
        # matches the reference: without an extended vocab, final = vocab_dist
        final_ref[...] = vocab_dist

    # packed side-output slab (padded to lane tiles); at B=2 these are
    # single-vreg stores and negligible next to the DMA/launch cost.
    misc_ref[:, 0:H] = h_new
    misc_ref[:, H:2 * H] = c_new
    misc_ref[:, 2 * H:4 * H] = c_t
    misc_ref[:, 4 * H:4 * H + T] = attn
    misc_ref[:, 4 * H + T:4 * H + 2 * T] = cov_out
    misc_ref[:, 4 * H + 2 * T:4 * H + 2 * T + 1] = p_gen


# ------------------------- decoder forward (wrapper) -------------------------

def decoder_forward(packed, y_t_1, s_t_1, encoder_outputs, encoder_feature,
                    enc_padding_mask, c_t_1, coverage, step,
                    extra_zeros=None, enc_batch_extend_vocab=None,
                    training=False):
    assert CONFIG['coverage'] and CONFIG['pgn'] and CONFIG['n_layers'] == 1
    H, E, V = CONFIG['hid_dim'], CONFIG['emb_dim'], CONFIG['sum_vocab']
    h0_all, c0_all = s_t_1
    h0, c0 = h0_all[0], c0_all[0]                    # single-layer LSTM state
    B = h0.shape[0]
    T = encoder_outputs.shape[1]
    n_extra = 0 if extra_zeros is None else extra_zeros.shape[1]
    has_ext = enc_batch_extend_vocab is not None
    do_step0 = (not training) and step == 0
    do_cov_update = bool(training or step > 0)
    V_out = (V + n_extra) if has_ext else V
    Vp = _round_up(V, 128)
    Wout = max(_round_up(V_out, 128), Vp) if has_ext else Vp
    Mpad = _round_up(4 * H + 2 * T + 1, 128)

    # the only wrapper glue left is the embedding gather; c_t_1 / y_emb / h0 /
    # c0 go in as separate kernel inputs (no XLA concatenate).
    y_emb = jnp.take(packed['embedding'], y_t_1, axis=0)        # (B, E)
    enc_ids = (enc_batch_extend_vocab.astype(jnp.int32) if has_ext
               else jnp.zeros((B, T), jnp.int32))

    kernel = functools.partial(
        _fused_decoder_kernel, H=H, E=E, T=T, Vp=Vp, Wout=Wout,
        do_step0=do_step0, do_cov_update=do_cov_update, has_ext=has_ext)

    # Single grid point: everything is VMEM-resident at these sizes.
    # TODO(synk): for real serving, loop decode steps inside one pallas_call
    # (sequential grid axis + carried VMEM state, weights loaded once) and add
    # a leading 'parallel' batch axis so v7x's second TensorCore is used.
    final_pad, misc = pl.pallas_call(
        kernel,
        out_shape=(jax.ShapeDtypeStruct((B, Wout), jnp.float32),
                   jax.ShapeDtypeStruct((B, Mpad), jnp.float32)),
    )(c_t_1, y_emb, h0, c0, encoder_outputs, encoder_feature,
      enc_padding_mask, coverage, enc_ids,
      packed['w_gatesx'], packed['w_dec'], packed['w_head'],
      packed['bias_slab'])

    final_dist = final_pad[:, :V_out]
    h_new = misc[:, 0:H]
    c_new = misc[:, H:2 * H]
    c_t = misc[:, 2 * H:4 * H]
    attn_dist = misc[:, 4 * H:4 * H + T]
    coverage_out = misc[:, 4 * H + T:4 * H + 2 * T]
    p_gen = misc[:, 4 * H + 2 * T:4 * H + 2 * T + 1]
    s_t = (h_new[None], c_new[None])
    return final_dist, s_t, c_t, attn_dist, p_gen, coverage_out


# ------------------------- parameter init & packing -------------------------

def init_params(key):
    E, H, V = CONFIG['emb_dim'], CONFIG['hid_dim'], CONFIG['sum_vocab']
    ks = jax.random.split(key, 17)

    def n(k, shape, scale=0.05):
        return (scale * jax.random.normal(k, shape)).astype(jnp.float32)

    return dict(
        embedding=n(ks[0], (V, E), 1e-2),
        # attention
        w_dec=n(ks[1], (2 * H, 2 * H)), b_dec=n(ks[2], (2 * H,)),
        w_c=n(ks[3], (2 * H,)), v=n(ks[4], (2 * H,)),
        # x_context
        x_context_w=n(ks[5], (2 * H + E, E)), x_context_b=n(ks[6], (E,)),
        # lstm (single layer), PyTorch-style separate biases, gate order i,f,g,o
        lstm_w_ih=n(ks[7], (E, 4 * H)), lstm_w_hh=n(ks[8], (H, 4 * H)),
        lstm_b_ih=n(ks[9], (4 * H,)), lstm_b_hh=n(ks[10], (4 * H,)),
        # pointer-generator: input order [c_t, h, c, x]
        p_gen_w=n(ks[11], (4 * H + E, 1)), p_gen_b=n(ks[12], (1,)),
        # output head: out1 input order [lstm_out, c_t]
        out1_w=n(ks[13], (3 * H, H)), out1_b=n(ks[14], (H,)),
        out2_w=n(ks[15], (H, V)), out2_b=n(ks[16], (V,)),
    )


def pack_params(p):
    """One-time weight packing:
      * x_context folded into the LSTM-gate weight (+ the p_gen x column),
      * out1@out2 fused into a single logits head over [h_new, c_new, c_t]
        (exact: there is no nonlinearity between out1 and out2),
      * matmul weights stored bf16, biases/small vectors in one (8,128) slab
        (logits bias padded with -1e30 so the kernel's softmax is lane-dense).
    """
    E, H, V = CONFIG['emb_dim'], CONFIG['hid_dim'], CONFIG['sum_vocab']
    Vp = _round_up(V, 128)
    assert 4 * H <= 128 and 2 * H <= 128 and Vp <= 128, \
        "bias-slab layout assumes 4H <= 128 and sum_vocab <= 128"
    bf16, f32 = jnp.bfloat16, jnp.float32

    wx, b_x = p['x_context_w'], p['x_context_b']            # (2H+E,E), (E,)
    w_ih, w_hh = p['lstm_w_ih'], p['lstm_w_hh']              # (E,4H), (H,4H)
    wp = p['p_gen_w']                                        # (4H+E,1): [c_t,h,c,x]

    # --- gate matmul over u = [c_t_1, y_emb, h0]  (K = 2H+E+H) ---
    w_gates = jnp.concatenate([wx @ w_ih, w_hh], axis=0)     # (2H+E+H, 4H)
    b_gates = p['lstm_b_ih'] + p['lstm_b_hh'] + b_x @ w_ih   # (4H,)
    wp_x = wp[4 * H:4 * H + E]                               # (E,1)
    pgx_col = jnp.concatenate([wx @ wp_x, jnp.zeros((H, 1), f32)], axis=0)
    w_gatesx = jnp.concatenate([w_gates, pgx_col], axis=1)   # (2H+E+H, 4H+1)
    b_pg_total = p['p_gen_b'] + b_x @ wp_x[:, 0]             # (1,)

    # --- fused out1->out2 head over z = [h_new, c_new, c_t] ---
    w1, b1 = p['out1_w'], p['out1_b']                        # (3H,H),(H,)
    w2, b2 = p['out2_w'], p['out2_b']                        # (H,V),(V,)
    w12 = w1 @ w2                                            # (3H,V)
    w_logit = jnp.zeros((4 * H, Vp), f32)
    w_logit = w_logit.at[0:H, :V].set(w12[0:H])              # lstm_out (= h_new)
    w_logit = w_logit.at[2 * H:4 * H, :V].set(w12[H:3 * H])  # c_t
    b_logit = jnp.full((Vp,), -1e30, f32)
    b_logit = b_logit.at[:V].set(b1 @ w2 + b2)
    pgz_col = jnp.zeros((4 * H, 1), f32)
    pgz_col = pgz_col.at[0:H].set(wp[2 * H:3 * H])           # h_new
    pgz_col = pgz_col.at[H:2 * H].set(wp[3 * H:4 * H])       # c_new
    pgz_col = pgz_col.at[2 * H:4 * H].set(wp[0:2 * H])       # c_t
    w_head = jnp.concatenate([w_logit, pgz_col], axis=1)     # (4H, Vp+1)

    # --- bias / small-vector slab (8, 128) f32 ---
    slab = jnp.zeros((8, 128), f32)
    slab = slab.at[0, :4 * H].set(b_gates)
    slab = slab.at[1, :2 * H].set(p['b_dec'])
    slab = slab.at[2, :2 * H].set(p['w_c'])
    slab = slab.at[3, :2 * H].set(p['v'])
    slab = slab.at[4, 0].set(b_pg_total[0])
    slab = slab.at[5, :Vp].set(b_logit)

    return dict(
        embedding=p['embedding'],
        w_gatesx=w_gatesx.astype(bf16),
        w_dec=p['w_dec'].astype(bf16),
        w_head=w_head.astype(bf16),
        bias_slab=slab,
    )


# ------------------------- driver -------------------------

if __name__ == "__main__":
    key = jax.random.PRNGKey(0)
    k_par, k_in = jax.random.split(key)
    params = init_params(k_par)
    packed = pack_params(params)

    B, T = 2, 8   # NOTE: a real serving path should batch >= 8 rows
    E, H, V = CONFIG['emb_dim'], CONFIG['hid_dim'], CONFIG['sum_vocab']
    kis = jax.random.split(k_in, 8)

    y_t_1 = jax.random.randint(kis[0], (B,), 0, V)
    h0 = (0.1 * jax.random.normal(kis[1], (1, B, H))).astype(jnp.float32)
    c0 = (0.1 * jax.random.normal(kis[2], (1, B, H))).astype(jnp.float32)
    encoder_outputs = (0.1 * jax.random.normal(kis[3], (B, T, 2 * H))).astype(jnp.float32)
    encoder_feature = (0.1 * jax.random.normal(kis[4], (B, T, 2 * H))).astype(jnp.float32)
    enc_padding_mask = jnp.ones((B, T), jnp.float32).at[1, T - 1].set(0.0)
    c_t_1 = (0.1 * jax.random.normal(kis[5], (B, 2 * H))).astype(jnp.float32)
    coverage = jnp.zeros((B, T), jnp.float32)
    enc_batch_extend_vocab = jax.random.randint(kis[6], (B, T), 0, V)

    fwd = jax.jit(decoder_forward, static_argnames=('step', 'training'))
    outs = fwd(packed, y_t_1, (h0, c0), encoder_outputs, encoder_feature,
               enc_padding_mask, c_t_1, coverage, step=1,
               enc_batch_extend_vocab=enc_batch_extend_vocab,
               training=False)
    final_dist, s_t, c_t, attn_dist, p_gen, coverage_out = outs
    jax.block_until_ready((final_dist, s_t, c_t, attn_dist, p_gen, coverage_out))

    assert final_dist.shape == (B, V)
    assert s_t[0].shape == (1, B, H) and s_t[1].shape == (1, B, H)
    assert c_t.shape == (B, 2 * H) and attn_dist.shape == (B, T)
    assert p_gen.shape == (B, 1) and coverage_out.shape == (B, T)
    assert bool(jnp.all(jnp.isfinite(final_dist)))
    # pointer-generator mixture of two normalized distributions; small slack
    # for the approx (EUP) reciprocals used in the normalizations.
    assert bool(jnp.all(jnp.abs(jnp.sum(final_dist, axis=-1) - 1.0) < 3e-3))
    print("KERNEL_OK")
</pallas_src>

<mosaic_0001>
module attributes {stable_mosaic.version = 11 : i64} {
  func.func @_fused_decoder_kernel(%arg0: memref<2x64xf32, #tpu.memory_space<vmem>>, %arg1: memref<2x32xf32, #tpu.memory_space<vmem>>, %arg2: memref<2x32xf32, #tpu.memory_space<vmem>>, %arg3: memref<2x32xf32, #tpu.memory_space<vmem>>, %arg4: memref<2x8x64xf32, #tpu.memory_space<vmem>>, %arg5: memref<2x8x64xf32, #tpu.memory_space<vmem>>, %arg6: memref<2x8xf32, #tpu.memory_space<vmem>>, %arg7: memref<2x8xf32, #tpu.memory_space<vmem>>, %arg8: memref<2x8xi32, #tpu.memory_space<vmem>>, %arg9: memref<128x129xbf16, #tpu.memory_space<vmem>>, %arg10: memref<64x64xbf16, #tpu.memory_space<vmem>>, %arg11: memref<128x129xbf16, #tpu.memory_space<vmem>>, %arg12: memref<8x128xf32, #tpu.memory_space<vmem>>, %arg13: memref<2x128xf32, #tpu.memory_space<vmem>>, %arg14: memref<2x256xf32, #tpu.memory_space<vmem>>) attributes {dimension_semantics = [], scalar_prefetch = 0 : i64, scratch_operands = 0 : i64, tpu.core_type = #tpu.core_type<tc>} {
    %c0 = arith.constant 0 : index
    %c0_0 = arith.constant 0 : index
    %0 = vector.load %arg12[%c0, %c0_0] : memref<8x128xf32, #tpu.memory_space<vmem>>, vector<8x128xf32>
    %1 = vector.extract_strided_slice %0 {offsets = [0, 0], sizes = [1, 128], strides = [1, 1]} : vector<8x128xf32> to vector<1x128xf32>
    %2 = vector.extract_strided_slice %0 {offsets = [1, 0], sizes = [1, 64], strides = [1, 1]} : vector<8x128xf32> to vector<1x64xf32>
    %3 = vector.extract_strided_slice %0 {offsets = [2, 0], sizes = [1, 64], strides = [1, 1]} : vector<8x128xf32> to vector<1x64xf32>
    %4 = vector.shape_cast %3 : vector<1x64xf32> to vector<1x1x64xf32>
    %5 = vector.extract_strided_slice %0 {offsets = [3, 0], sizes = [1, 64], strides = [1, 1]} : vector<8x128xf32> to vector<1x64xf32>
    %6 = vector.shape_cast %5 : vector<1x64xf32> to vector<1x1x64xf32>
    %7 = vector.extract_strided_slice %0 {offsets = [4, 0], sizes = [1, 1], strides = [1, 1]} : vector<8x128xf32> to vector<1x1xf32>
    %8 = vector.extract_strided_slice %0 {offsets = [5, 0], sizes = [1, 128], strides = [1, 1]} : vector<8x128xf32> to vector<1x128xf32>
    %c0_1 = arith.constant 0 : index
    %c0_2 = arith.constant 0 : index
    %c0_3 = arith.constant 0 : index
    %9 = vector.load %arg4[%c0_1, %c0_2, %c0_3] : memref<2x8x64xf32, #tpu.memory_space<vmem>>, vector<2x8x64xf32>
    %c0_4 = arith.constant 0 : index
    %c0_5 = arith.constant 0 : index
    %c0_6 = arith.constant 0 : index
    %10 = vector.load %arg5[%c0_4, %c0_5, %c0_6] : memref<2x8x64xf32, #tpu.memory_space<vmem>>, vector<2x8x64xf32>
    %c0_7 = arith.constant 0 : index
    %c0_8 = arith.constant 0 : index
    %11 = vector.load %arg6[%c0_7, %c0_8] : memref<2x8xf32, #tpu.memory_space<vmem>>, vector<2x8xf32>
    %c0_9 = arith.constant 0 : index
    %c0_10 = arith.constant 0 : index
    %12 = vector.load %arg7[%c0_9, %c0_10] : memref<2x8xf32, #tpu.memory_space<vmem>>, vector<2x8xf32>
    %c0_11 = arith.constant 0 : index
    %c0_12 = arith.constant 0 : index
    %13 = vector.load %arg0[%c0_11, %c0_12] : memref<2x64xf32, #tpu.memory_space<vmem>>, vector<2x64xf32>
    %c0_13 = arith.constant 0 : index
    %c0_14 = arith.constant 0 : index
    %14 = vector.load %arg1[%c0_13, %c0_14] : memref<2x32xf32, #tpu.memory_space<vmem>>, vector<2x32xf32>
    %c0_15 = arith.constant 0 : index
    %c0_16 = arith.constant 0 : index
    %15 = vector.load %arg2[%c0_15, %c0_16] : memref<2x32xf32, #tpu.memory_space<vmem>>, vector<2x32xf32>
    %c0_17 = arith.constant 0 : index
    %c0_18 = arith.constant 0 : index
    %16 = vector.load %arg3[%c0_17, %c0_18] : memref<2x32xf32, #tpu.memory_space<vmem>>, vector<2x32xf32>
    %17 = arith.truncf %13 : vector<2x64xf32> to vector<2x64xbf16>
    %c0_19 = arith.constant 0 : index
    %c0_20 = arith.constant 0 : index
    %18 = vector.load %arg9[%c0_19, %c0_20] : memref<128x129xbf16, #tpu.memory_space<vmem>>, vector<64x129xbf16>
    %cst = arith.constant dense<0.000000e+00> : vector<2x129xf32>
    %19 = tpu.matmul %17, %18, %cst {dimension_numbers = #tpu.dot_dimension_numbers<[1], [0], [0], [1], [0, 0, 1, 1], [], []>} : vector<2x64xbf16>, vector<64x129xbf16>, vector<2x129xf32> -> vector<2x129xf32>
    %20 = arith.truncf %14 : vector<2x32xf32> to vector<2x32xbf16>
    %c64 = arith.constant 64 : index
    %c0_21 = arith.constant 0 : index
    %21 = vector.load %arg9[%c64, %c0_21] : memref<128x129xbf16, #tpu.memory_space<vmem>>, vector<32x129xbf16>
    %cst_22 = arith.constant dense<0.000000e+00> : vector<2x129xf32>
    %22 = tpu.matmul %20, %21, %cst_22 {dimension_numbers = #tpu.dot_dimension_numbers<[1], [0], [0], [1], [0, 0, 1, 1], [], []>} : vector<2x32xbf16>, vector<32x129xbf16>, vector<2x129xf32> -> vector<2x129xf32>
    %23 = arith.addf %19, %22 : vector<2x129xf32>
    %24 = arith.truncf %15 : vector<2x32xf32> to vector<2x32xbf16>
    %c96 = arith.constant 96 : index
    %c0_23 = arith.constant 0 : index
    %25 = vector.load %arg9[%c96, %c0_23] : memref<128x129xbf16, #tpu.memory_space<vmem>>, vector<32x129xbf16>
    %cst_24 = arith.constant dense<0.000000e+00> : vector<2x129xf32>
    %26 = tpu.matmul %24, %25, %cst_24 {dimension_numbers = #tpu.dot_dimension_numbers<[1], [0], [0], [1], [0, 0, 1, 1], [], []>} : vector<2x32xbf16>, vector<32x129xbf16>, vector<2x129xf32> -> vector<2x129xf32>
    %27 = arith.addf %23, %26 : vector<2x129xf32>
    %28 = vector.extract_strided_slice %27 {offsets = [0, 0], sizes = [2, 128], strides = [1, 1]} : vector<2x129xf32> to vector<2x128xf32>
    %29 = vector.broadcast %1 : vector<1x128xf32> to vector<2x128xf32>
    %30 = arith.addf %28, %29 : vector<2x128xf32>
    %31 = vector.extract_strided_slice %27 {offsets = [0, 128], sizes = [2, 1], strides = [1, 1]} : vector<2x129xf32> to vector<2x1xf32>
    %32 = vector.extract_strided_slice %30 {offsets = [0, 0], sizes = [2, 32], strides = [1, 1]} : vector<2x128xf32> to vector<2x32xf32>
    %33 = arith.negf %32 : vector<2x32xf32>
    %34 = math.exp %33 : vector<2x32xf32>
    %cst_25 = arith.constant 1.000000e+00 : f32
    %35 = vector.broadcast %cst_25 : f32 to vector<2x32xf32>
    %36 = arith.addf %35, %34 : vector<2x32xf32>
    %37 = arith.divf %35, %36 : vector<2x32xf32>
    %38 = vector.extract_strided_slice %30 {offsets = [0, 32], sizes = [2, 32], strides = [1, 1]} : vector<2x128xf32> to vector<2x32xf32>
    %39 = arith.negf %38 : vector<2x32xf32>
    %40 = math.exp %39 : vector<2x32xf32>
    %cst_26 = arith.constant 1.000000e+00 : f32
    %41 = vector.broadcast %cst_26 : f32 to vector<2x32xf32>
    %42 = arith.addf %41, %40 : vector<2x32xf32>
    %43 = arith.divf %41, %42 : vector<2x32xf32>
    %44 = vector.extract_strided_slice %30 {offsets = [0, 64], sizes = [2, 32], strides = [1, 1]} : vector<2x128xf32> to vector<2x32xf32>
    %45 = math.tanh %44 : vector<2x32xf32>
    %46 = vector.extract_strided_slice %30 {offsets = [0, 96], sizes = [2, 32], strides = [1, 1]} : vector<2x128xf32> to vector<2x32xf32>
    %47 = arith.negf %46 : vector<2x32xf32>
    %48 = math.exp %47 : vector<2x32xf32>
    %cst_27 = arith.constant 1.000000e+00 : f32
    %49 = vector.broadcast %cst_27 : f32 to vector<2x32xf32>
    %50 = arith.addf %49, %48 : vector<2x32xf32>
    %51 = arith.divf %49, %50 : vector<2x32xf32>
    %52 = arith.mulf %43, %16 : vector<2x32xf32>
    %53 = arith.mulf %37, %45 : vector<2x32xf32>
    %54 = arith.addf %52, %53 : vector<2x32xf32>
    %55 = math.tanh %54 : vector<2x32xf32>
    %56 = arith.mulf %51, %55 : vector<2x32xf32>
    %57 = arith.truncf %56 : vector<2x32xf32> to vector<2x32xbf16>
    %c0_28 = arith.constant 0 : index
    %c0_29 = arith.constant 0 : index
    %58 = vector.load %arg10[%c0_28, %c0_29] : memref<64x64xbf16, #tpu.memory_space<vmem>>, vector<32x64xbf16>
    %cst_30 = arith.constant dense<0.000000e+00> : vector<2x64xf32>
    %59 = tpu.matmul %57, %58, %cst_30 {dimension_numbers = #tpu.dot_dimension_numbers<[1], [0], [0], [1], [0, 0, 1, 1], [], []>} : vector<2x32xbf16>, vector<32x64xbf16>, vector<2x64xf32> -> vector<2x64xf32>
    %60 = arith.truncf %54 : vector<2x32xf32> to vector<2x32xbf16>
    %c32 = arith.constant 32 : index
    %c0_31 = arith.constant 0 : index
    %61 = vector.load %arg10[%c32, %c0_31] : memref<64x64xbf16, #tpu.memory_space<vmem>>, vector<32x64xbf16>
    %cst_32 = arith.constant dense<0.000000e+00> : vector<2x64xf32>
    %62 = tpu.matmul %60, %61, %cst_32 {dimension_numbers = #tpu.dot_dimension_numbers<[1], [0], [0], [1], [0, 0, 1, 1], [], []>} : vector<2x32xbf16>, vector<32x64xbf16>, vector<2x64xf32> -> vector<2x64xf32>
    %63 = arith.addf %59, %62 : vector<2x64xf32>
    %64 = vector.broadcast %2 : vector<1x64xf32> to vector<2x64xf32>
    %65 = arith.addf %63, %64 : vector<2x64xf32>
    %66 = vector.shape_cast %65 : vector<2x64xf32> to vector<2x1x64xf32>
    %67 = vector.broadcast %66 : vector<2x1x64xf32> to vector<2x8x64xf32>
    %68 = arith.addf %10, %67 : vector<2x8x64xf32>
    %69 = vector.shape_cast %12 : vector<2x8xf32> to vector<2x8x1xf32>
    %70 = vector.broadcast %69 : vector<2x8x1xf32> to vector<2x8x64xf32>
    %71 = vector.broadcast %4 : vector<1x1x64xf32> to vector<2x8x64xf32>
    %72 = arith.mulf %70, %71 : vector<2x8x64xf32>
    %73 = arith.addf %68, %72 : vector<2x8x64xf32>
    %74 = math.tanh %73 : vector<2x8x64xf32>
    %75 = vector.broadcast %6 : vector<1x1x64xf32> to vector<2x8x64xf32>
    %76 = arith.mulf %74, %75 : vector<2x8x64xf32>
    %cst_33 = arith.constant dense<0.000000e+00> : vector<2x8xf32>
    %77 = vector.multi_reduction <add>, %76, %cst_33 [2] : vector<2x8x64xf32> to vector<2x8xf32>
    %cst_34 = arith.constant dense<0xFF800000> : vector<2xf32>
    %78 = vector.multi_reduction <maximumf>, %77, %cst_34 [1] : vector<2x8xf32> to vector<2xf32>
    %79 = vector.shape_cast %78 : vector<2xf32> to vector<2x1xf32>
    %80 = vector.broadcast %79 : vector<2x1xf32> to vector<2x8xf32>
    %81 = arith.subf %77, %80 : vector<2x8xf32>
    %82 = math.exp %81 : vector<2x8xf32>
    %cst_35 = arith.constant dense<0.000000e+00> : vector<2xf32>
    %83 = vector.multi_reduction <add>, %82, %cst_35 [1] : vector<2x8xf32> to vector<2xf32>
    %84 = vector.shape_cast %83 : vector<2xf32> to vector<2x1xf32>
    %85 = tpu.reciprocal %84 {approx = true} : vector<2x1xf32> -> vector<2x1xf32>
    %86 = vector.broadcast %85 : vector<2x1xf32> to vector<2x8xf32>
    %87 = arith.mulf %82, %86 : vector<2x8xf32>
    %88 = arith.mulf %87, %11 : vector<2x8xf32>
    %cst_36 = arith.constant dense<0.000000e+00> : vector<2xf32>
    %89 = vector.multi_reduction <add>, %88, %cst_36 [1] : vector<2x8xf32> to vector<2xf32>
    %90 = vector.shape_cast %89 : vector<2xf32> to vector<2x1xf32>
    %91 = tpu.reciprocal %90 {approx = true} : vector<2x1xf32> -> vector<2x1xf32>
    %92 = vector.broadcast %91 : vector<2x1xf32> to vector<2x8xf32>
    %93 = arith.mulf %88, %92 : vector<2x8xf32>
    %94 = vector.shape_cast %93 : vector<2x8xf32> to vector<2x8x1xf32>
    %95 = vector.broadcast %94 : vector<2x8x1xf32> to vector<2x8x64xf32>
    %96 = arith.mulf %95, %9 : vector<2x8x64xf32>
    %cst_37 = arith.constant dense<0.000000e+00> : vector<2x64xf32>
    %97 = vector.multi_reduction <add>, %96, %cst_37 [1] : vector<2x8x64xf32> to vector<2x64xf32>
    %98 = arith.addf %12, %93 : vector<2x8xf32>
    %99 = arith.truncf %56 : vector<2x32xf32> to vector<2x32xbf16>
    %c0_38 = arith.constant 0 : index
    %c0_39 = arith.constant 0 : index
    %100 = vector.load %arg11[%c0_38, %c0_39] : memref<128x129xbf16, #tpu.memory_space<vmem>>, vector<32x129xbf16>
    %cst_40 = arith.constant dense<0.000000e+00> : vector<2x129xf32>
    %101 = tpu.matmul %99, %100, %cst_40 {dimension_numbers = #tpu.dot_dimension_numbers<[1], [0], [0], [1], [0, 0, 1, 1], [], []>} : vector<2x32xbf16>, vector<32x129xbf16>, vector<2x129xf32> -> vector<2x129xf32>
    %102 = arith.truncf %54 : vector<2x32xf32> to vector<2x32xbf16>
    %c32_41 = arith.constant 32 : index
    %c0_42 = arith.constant 0 : index
    %103 = vector.load %arg11[%c32_41, %c0_42] : memref<128x129xbf16, #tpu.memory_space<vmem>>, vector<32x129xbf16>
    %cst_43 = arith.constant dense<0.000000e+00> : vector<2x129xf32>
    %104 = tpu.matmul %102, %103, %cst_43 {dimension_numbers = #tpu.dot_dimension_numbers<[1], [0], [0], [1], [0, 0, 1, 1], [], []>} : vector<2x32xbf16>, vector<32x129xbf16>, vector<2x129xf32> -> vector<2x129xf32>
    %105 = arith.addf %101, %104 : vector<2x129xf32>
    %106 = arith.truncf %97 : vector<2x64xf32> to vector<2x64xbf16>
    %c64_44 = arith.constant 64 : index
    %c0_45 = arith.constant 0 : index
    %107 = vector.load %arg11[%c64_44, %c0_45] : memref<128x129xbf16, #tpu.memory_space<vmem>>, vector<64x129xbf16>
    %cst_46 = arith.constant dense<0.000000e+00> : vector<2x129xf32>
    %108 = tpu.matmul %106, %107, %cst_46 {dimension_numbers = #tpu.dot_dimension_numbers<[1], [0], [0], [1], [0, 0, 1, 1], [], []>} : vector<2x64xbf16>, vector<64x129xbf16>, vector<2x129xf32> -> vector<2x129xf32>
    %109 = arith.addf %105, %108 : vector<2x129xf32>
    %110 = vector.extract_strided_slice %109 {offsets = [0, 0], sizes = [2, 128], strides = [1, 1]} : vector<2x129xf32> to vector<2x128xf32>
    %111 = vector.broadcast %8 : vector<1x128xf32> to vector<2x128xf32>
    %112 = arith.addf %110, %111 : vector<2x128xf32>
    %113 = vector.extract_strided_slice %109 {offsets = [0, 128], sizes = [2, 1], strides = [1, 1]} : vector<2x129xf32> to vector<2x1xf32>
    %114 = arith.addf %113, %31 : vector<2x1xf32>
    %115 = vector.broadcast %7 : vector<1x1xf32> to vector<2x1xf32>
    %116 = arith.addf %114, %115 : vector<2x1xf32>
    %117 = arith.negf %116 : vector<2x1xf32>
    %118 = math.exp %117 : vector<2x1xf32>
    %cst_47 = arith.constant 1.000000e+00 : f32
    %119 = vector.broadcast %cst_47 : f32 to vector<2x1xf32>
    %120 = arith.addf %119, %118 : vector<2x1xf32>
    %121 = arith.divf %119, %120 : vector<2x1xf32>
    %cst_48 = arith.constant dense<0xFF800000> : vector<2xf32>
    %122 = vector.multi_reduction <maximumf>, %112, %cst_48 [1] : vector<2x128xf32> to vector<2xf32>
    %123 = vector.shape_cast %122 : vector<2xf32> to vector<2x1xf32>
    %124 = vector.broadcast %123 : vector<2x1xf32> to vector<2x128xf32>
    %125 = arith.subf %112, %124 : vector<2x128xf32>
    %126 = math.exp %125 : vector<2x128xf32>
    %cst_49 = arith.constant dense<0.000000e+00> : vector<2xf32>
    %127 = vector.multi_reduction <add>, %126, %cst_49 [1] : vector<2x128xf32> to vector<2xf32>
    %128 = vector.shape_cast %127 : vector<2xf32> to vector<2x1xf32>
    %129 = tpu.reciprocal %128 {approx = true} : vector<2x1xf32> -> vector<2x1xf32>
    %130 = vector.broadcast %129 : vector<2x1xf32> to vector<2x128xf32>
    %131 = arith.mulf %126, %130 : vector<2x128xf32>
    %cst_50 = arith.constant 1.000000e+00 : f32
    %132 = vector.broadcast %cst_50 : f32 to vector<2x1xf32>
    %133 = arith.subf %132, %121 : vector<2x1xf32>
    %134 = vector.broadcast %133 : vector<2x1xf32> to vector<2x8xf32>
    %135 = arith.mulf %134, %93 : vector<2x8xf32>
    %136 = vector.broadcast %121 : vector<2x1xf32> to vector<2x128xf32>
    %137 = arith.mulf %136, %131 : vector<2x128xf32>
    %c0_51 = arith.constant 0 : index
    %c0_52 = arith.constant 0 : index
    %138 = vector.load %arg8[%c0_51, %c0_52] : memref<2x8xi32, #tpu.memory_space<vmem>>, vector<2x8xi32>
    %139 = tpu.iota {dimensions = array<i32: 1>} : vector<2x128xi32>
    %cst_53 = arith.constant 0.000000e+00 : f32
    %140 = vector.broadcast %cst_53 : f32 to vector<2x128xf32>
    %141 = vector.extract_strided_slice %138 {offsets = [0, 0], sizes = [2, 1], strides = [1, 1]} : vector<2x8xi32> to vector<2x1xi32>
    %142 = vector.broadcast %141 : vector<2x1xi32> to vector<2x128xi32>
    %143 = arith.cmpi eq, %142, %139 : vector<2x128xi32>
    %144 = vector.extract_strided_slice %135 {offsets = [0, 0], sizes = [2, 1], strides = [1, 1]} : vector<2x8xf32> to vector<2x1xf32>
    %cst_54 = arith.constant 0.000000e+00 : f32
    %145 = vector.shape_cast %144 : vector<2x1xf32> to vector<2x1xf32>
    %146 = vector.broadcast %145 : vector<2x1xf32> to vector<2x128xf32>
    %147 = vector.broadcast %cst_54 : f32 to vector<2x128xf32>
    %148 = arith.select %143, %146, %147 : vector<2x128xi1>, vector<2x128xf32>
    %149 = arith.addf %140, %148 : vector<2x128xf32>
    %150 = vector.extract_strided_slice %138 {offsets = [0, 1], sizes = [2, 1], strides = [1, 1]} : vector<2x8xi32> to vector<2x1xi32>
    %151 = vector.broadcast %150 : vector<2x1xi32> to vector<2x128xi32>
    %152 = arith.cmpi eq, %151, %139 : vector<2x128xi32>
    %153 = vector.extract_strided_slice %135 {offsets = [0, 1], sizes = [2, 1], strides = [1, 1]} : vector<2x8xf32> to vector<2x1xf32>
    %cst_55 = arith.constant 0.000000e+00 : f32
    %154 = vector.shape_cast %153 : vector<2x1xf32> to vector<2x1xf32>
    %155 = vector.broadcast %154 : vector<2x1xf32> to vector<2x128xf32>
    %156 = vector.broadcast %cst_55 : f32 to vector<2x128xf32>
    %157 = arith.select %152, %155, %156 : vector<2x128xi1>, vector<2x128xf32>
    %158 = arith.addf %149, %157 : vector<2x128xf32>
    %159 = vector.extract_strided_slice %138 {offsets = [0, 2], sizes = [2, 1], strides = [1, 1]} : vector<2x8xi32> to vector<2x1xi32>
    %160 = vector.broadcast %159 : vector<2x1xi32> to vector<2x128xi32>
    %161 = arith.cmpi eq, %160, %139 : vector<2x128xi32>
    %162 = vector.extract_strided_slice %135 {offsets = [0, 2], sizes = [2, 1], strides = [1, 1]} : vector<2x8xf32> to vector<2x1xf32>
    %cst_56 = arith.constant 0.000000e+00 : f32
    %163 = vector.shape_cast %162 : vector<2x1xf32> to vector<2x1xf32>
    %164 = vector.broadcast %163 : vector<2x1xf32> to vector<2x128xf32>
    %165 = vector.broadcast %cst_56 : f32 to vector<2x128xf32>
    %166 = arith.select %161, %164, %165 : vector<2x128xi1>, vector<2x128xf32>
    %167 = arith.addf %158, %166 : vector<2x128xf32>
    %168 = vector.extract_strided_slice %138 {offsets = [0, 3], sizes = [2, 1], strides = [1, 1]} : vector<2x8xi32> to vector<2x1xi32>
    %169 = vector.broadcast %168 : vector<2x1xi32> to vector<2x128xi32>
    %170 = arith.cmpi eq, %169, %139 : vector<2x128xi32>
    %171 = vector.extract_strided_slice %135 {offsets = [0, 3], sizes = [2, 1], strides = [1, 1]} : vector<2x8xf32> to vector<2x1xf32>
    %cst_57 = arith.constant 0.000000e+00 : f32
    %172 = vector.shape_cast %171 : vector<2x1xf32> to vector<2x1xf32>
    %173 = vector.broadcast %172 : vector<2x1xf32> to vector<2x128xf32>
    %174 = vector.broadcast %cst_57 : f32 to vector<2x128xf32>
    %175 = arith.select %170, %173, %174 : vector<2x128xi1>, vector<2x128xf32>
    %176 = arith.addf %167, %175 : vector<2x128xf32>
    %177 = vector.extract_strided_slice %138 {offsets = [0, 4], sizes = [2, 1], strides = [1, 1]} : vector<2x8xi32> to vector<2x1xi32>
    %178 = vector.broadcast %177 : vector<2x1xi32> to vector<2x128xi32>
    %179 = arith.cmpi eq, %178, %139 : vector<2x128xi32>
    %180 = vector.extract_strided_slice %135 {offsets = [0, 4], sizes = [2, 1], strides = [1, 1]} : vector<2x8xf32> to vector<2x1xf32>
    %cst_58 = arith.constant 0.000000e+00 : f32
    %181 = vector.shape_cast %180 : vector<2x1xf32> to vector<2x1xf32>
    %182 = vector.broadcast %181 : vector<2x1xf32> to vector<2x128xf32>
    %183 = vector.broadcast %cst_58 : f32 to vector<2x128xf32>
    %184 = arith.select %179, %182, %183 : vector<2x128xi1>, vector<2x128xf32>
    %185 = arith.addf %176, %184 : vector<2x128xf32>
    %186 = vector.extract_strided_slice %138 {offsets = [0, 5], sizes = [2, 1], strides = [1, 1]} : vector<2x8xi32> to vector<2x1xi32>
    %187 = vector.broadcast %186 : vector<2x1xi32> to vector<2x128xi32>
    %188 = arith.cmpi eq, %187, %139 : vector<2x128xi32>
    %189 = vector.extract_strided_slice %135 {offsets = [0, 5], sizes = [2, 1], strides = [1, 1]} : vector<2x8xf32> to vector<2x1xf32>
    %cst_59 = arith.constant 0.000000e+00 : f32
    %190 = vector.shape_cast %189 : vector<2x1xf32> to vector<2x1xf32>
    %191 = vector.broadcast %190 : vector<2x1xf32> to vector<2x128xf32>
    %192 = vector.broadcast %cst_59 : f32 to vector<2x128xf32>
    %193 = arith.select %188, %191, %192 : vector<2x128xi1>, vector<2x128xf32>
    %194 = arith.addf %185, %193 : vector<2x128xf32>
    %195 = vector.extract_strided_slice %138 {offsets = [0, 6], sizes = [2, 1], strides = [1, 1]} : vector<2x8xi32> to vector<2x1xi32>
    %196 = vector.broadcast %195 : vector<2x1xi32> to vector<2x128xi32>
    %197 = arith.cmpi eq, %196, %139 : vector<2x128xi32>
    %198 = vector.extract_strided_slice %135 {offsets = [0, 6], sizes = [2, 1], strides = [1, 1]} : vector<2x8xf32> to vector<2x1xf32>
    %cst_60 = arith.constant 0.000000e+00 : f32
    %199 = vector.shape_cast %198 : vector<2x1xf32> to vector<2x1xf32>
    %200 = vector.broadcast %199 : vector<2x1xf32> to vector<2x128xf32>
    %201 = vector.broadcast %cst_60 : f32 to vector<2x128xf32>
    %202 = arith.select %197, %200, %201 : vector<2x128xi1>, vector<2x128xf32>
    %203 = arith.addf %194, %202 : vector<2x128xf32>
    %204 = vector.extract_strided_slice %138 {offsets = [0, 7], sizes = [2, 1], strides = [1, 1]} : vector<2x8xi32> to vector<2x1xi32>
    %205 = vector.broadcast %204 : vector<2x1xi32> to vector<2x128xi32>
    %206 = arith.cmpi eq, %205, %139 : vector<2x128xi32>
    %207 = vector.extract_strided_slice %135 {offsets = [0, 7], sizes = [2, 1], strides = [1, 1]} : vector<2x8xf32> to vector<2x1xf32>
    %cst_61 = arith.constant 0.000000e+00 : f32
    %208 = vector.shape_cast %207 : vector<2x1xf32> to vector<2x1xf32>
    %209 = vector.broadcast %208 : vector<2x1xf32> to vector<2x128xf32>
    %210 = vector.broadcast %cst_61 : f32 to vector<2x128xf32>
    %211 = arith.select %206, %209, %210 : vector<2x128xi1>, vector<2x128xf32>
    %212 = arith.addf %203, %211 : vector<2x128xf32>
    %213 = arith.addf %137, %212 : vector<2x128xf32>
    %c0_62 = arith.constant 0 : index
    %c0_63 = arith.constant 0 : index
    %214 = vector.load %arg13[%c0_62, %c0_63] : memref<2x128xf32, #tpu.memory_space<vmem>>, vector<2x128xf32>
    tpu.vector_store %arg13[%c0_62, %c0_63], %213 {strides = array<i32>} : memref<2x128xf32, #tpu.memory_space<vmem>>, vector<2x128xf32>,
    %c0_64 = arith.constant 0 : index
    %c0_65 = arith.constant 0 : index
    %215 = vector.load %arg14[%c0_64, %c0_65] : memref<2x256xf32, #tpu.memory_space<vmem>>, vector<2x32xf32>
    tpu.vector_store %arg14[%c0_64, %c0_65], %56 {strides = array<i32>} : memref<2x256xf32, #tpu.memory_space<vmem>>, vector<2x32xf32>,
    %c0_66 = arith.constant 0 : index
    %c32_67 = arith.constant 32 : index
    %216 = vector.load %arg14[%c0_66, %c32_67] : memref<2x256xf32, #tpu.memory_space<vmem>>, vector<2x32xf32>
    tpu.vector_store %arg14[%c0_66, %c32_67], %54 {strides = array<i32>} : memref<2x256xf32, #tpu.memory_space<vmem>>, vector<2x32xf32>,
    %c0_68 = arith.constant 0 : index
    %c64_69 = arith.constant 64 : index
    %217 = vector.load %arg14[%c0_68, %c64_69] : memref<2x256xf32, #tpu.memory_space<vmem>>, vector<2x64xf32>
    tpu.vector_store %arg14[%c0_68, %c64_69], %97 {strides = array<i32>} : memref<2x256xf32, #tpu.memory_space<vmem>>, vector<2x64xf32>,
    %c0_70 = arith.constant 0 : index
    %c128 = arith.constant 128 : index
    %218 = vector.load %arg14[%c0_70, %c128] : memref<2x256xf32, #tpu.memory_space<vmem>>, vector<2x8xf32>
    tpu.vector_store %arg14[%c0_70, %c128], %93 {strides = array<i32>} : memref<2x256xf32, #tpu.memory_space<vmem>>, vector<2x8xf32>,
    %c0_71 = arith.constant 0 : index
    %c136 = arith.constant 136 : index
    %219 = vector.load %arg14[%c0_71, %c136] : memref<2x256xf32, #tpu.memory_space<vmem>>, vector<2x8xf32>
    tpu.vector_store %arg14[%c0_71, %c136], %98 {strides = array<i32>} : memref<2x256xf32, #tpu.memory_space<vmem>>, vector<2x8xf32>,
    %c0_72 = arith.constant 0 : index
    %c144 = arith.constant 144 : index
    %220 = vector.load %arg14[%c0_72, %c144] : memref<2x256xf32, #tpu.memory_space<vmem>>, vector<2x1xf32>
    tpu.vector_store %arg14[%c0_72, %c144], %121 {strides = array<i32>} : memref<2x256xf32, #tpu.memory_space<vmem>>, vector<2x1xf32>,
    return
  }
}

</mosaic_0001>

<bundles_post_ra>
// kernel: decoder_forward.1
= control target key start
LH: loop header
LB: loop body
LE: loop exit
PB: predicated region body
PF: predicated region fallthrough
CT: control target
= control target key end

     0   :  { %v1438_v2 = vmov 0   ;;  %vm93_vm0 = vcmask 261120   ;;  %s1879_s0 = inlined_call_operand.vmem [shape: f32[2,64], index: 0, kind: input, shape index: {}]   ;;  %s1880_s1 = inlined_call_operand.vmem [shape: f32[2,32], index: 1, kind: input, shape index: {}]   ;;  %s1881_s2 = inlined_call_operand.vmem [shape: f32[2,32], index: 2, kind: input, shape index: {}]   ;;  %s1882_s3 = inlined_call_operand.vmem [shape: f32[2,32], index: 3, kind: input, shape index: {}]   ;;  %s1883_s4 = inlined_call_operand.vmem [shape: f32[2,8,64], index: 4, kind: input, shape index: {}]   ;;  %s1884_s5 = inlined_call_operand.vmem [shape: f32[2,8,64], index: 5, kind: input, shape index: {}]   ;;  %s1885_s6 = inlined_call_operand.vmem [shape: f32[2,8], index: 6, kind: input, shape index: {}]   ;;  %s1886_s7 = inlined_call_operand.vmem [shape: f32[2,8], index: 7, kind: input, shape index: {}]   ;;  %s1887_s8 = inlined_call_operand.vmem [shape: s32[2,8], index: 8, kind: input, shape index: {}]   ;;  %s1888_s9 = inlined_call_operand.vmem [shape: bf16[128,129], index: 9, kind: input, shape index: {}]   ;;  %s1889_s10 = inlined_call_operand.vmem [shape: bf16[64,64], index: 10, kind: input, shape index: {}]   ;;  %s1890_s11 = inlined_call_operand.vmem [shape: bf16[128,129], index: 11, kind: input, shape index: {}]   ;;  %s1891_s12 = inlined_call_operand.vmem [shape: f32[8,128], index: 12, kind: input, shape index: {}]   ;;  %s1892_s13 = inlined_call_operand.hbm [shape: f32[2,128], index: 13, kind: output, shape index: {0}]   ;;  %s1893_s14 = inlined_call_operand.vmem [shape: f32[2,256], index: 14, kind: output, shape index: {1}]  }
   0x1   :  { %v1336_v0 = vld [vmem:[%s1888_s9 + $0x54] ss:$8 sps:$4 sm:$0xff]   ;;  %v1338_v1 = vld [vmem:[%s1888_s9 + $0x50] ss:$8 sps:$4 sm:$0xff]   ;;  %129 = vmatprep.mubr.bf16.mxu1 %v1438_v2  ;;  %283 = vmatprep.mubr.bf16.mxu0 %v1438_v2  ;;  %v1339_v3 = vld [vmem:[%s1888_s9 + $0x44] ss:$8 sps:$4 sm:$0xff]  }
   0x2   :  { %109 = vmatprep.subr.bf16.mxu1 %v1336_v0  ;;  %v1341_v4 = vld [vmem:[%s1888_s9 + $0x40] ss:$8 sps:$4 sm:$0xff]   ;;  %1319 = vset.pattern.permute.xlu1 %v1438_v2  ;;  %v1344_v6 = vld [vmem:[%s1888_s9 + $0x34] ss:$8 sps:$4 sm:$0xff]   ;;  %v1350_v9 = vld [vmem:[%s1888_s9 + $0x70] ss:$8 sps:$4 sm:$0xff]  }
   0x3   :  { %110 = vmatpush1.bf16.msra.mxu1 %v1338_v1  ;;  %v56_v5 = vld [vmem:[%s1880_s1] sm:$0x3]  ;;  %1318 = vset.pattern.permute.xlu0 %v1438_v2  ;;  %v1348_v8 = vld [vmem:[%s1888_s9 + $0x74] ss:$8 sps:$4 sm:$0xff]   ;;  %v1342_v10 = vld [vmem:[%s1888_s9 + $0x30] ss:$8 sps:$4 sm:$0xff]  }
   0x4   :  { %111 = vmatprep.subr.bf16.mxu1 %v1339_v3  ;;  %v68_v7 = vpack.c.bf16 %v56_v5, %v56_v5  ;;  %v1347_v11 = vld [vmem:[%s1888_s9 + $0x24] ss:$8 sps:$4 sm:$0xff]   ;;  %263 = vmatprep.subr.bf16.mxu0 %v1348_v8  ;;  %v1356_v13 = vld [vmem:[%s1888_s9 + $0x60] ss:$8 sps:$4 sm:$0xff]   ;;  %v1353_v15 = vld [vmem:[%s1888_s9 + $0x14] ss:$8 sps:$4 sm:$0xff]  }
   0x5   :  { %264 = vmatpush1.bf16.msra.mxu0 %v1350_v9  ;;  %v1354_v12 = vld [vmem:[%s1888_s9 + $0x64] ss:$8 sps:$4 sm:$0xff]   ;;  %v1345_v14 = vld [vmem:[%s1888_s9 + $0x20] ss:$8 sps:$4 sm:$0xff]   ;;  %v1351_v18 = vld [vmem:[%s1888_s9 + $0x10] ss:$8 sps:$4 sm:$0xff]  }
   0x6   :  { %265 = vmatprep.subr.bf16.mxu0 %v1354_v12  ;;  %v57_v16 = vld [vmem:[%s1881_s2] sm:$0x3]  ;;  %v1359_v19 = vld [vmem:[%s1888_s9 + $0x4] ss:$8 sps:$4 sm:$0xff]  }
   0x7   :  { %112 = vmatpush1.bf16.msra.mxu1 %v1341_v4  ;;  %v223_v17 = vpack.c.bf16 %v57_v16, %v57_v16  ;;  %v1357_v20 = vld [vmem:[%s1888_s9] ss:$8 sps:$4 sm:$0xff]  }
   0x8   :  { %190 = vmatprep.subr.bf16.mxu1 %v1344_v6  ;;  %v55_v21 = vld [vmem:[%s1879_s0] sm:$0x3] }
   0x9   :  { %266 = vmatpush1.bf16.msra.mxu0 %v1356_v13 }
   0xa   :  { %1236 = vmatmul.mubr.msk.bf16.vlgmr.msra.gmra.mxu1 %vm93_vm0, %v68_v7 }
   0xb   :  { %191 = vmatpush1.bf16.msra.mxu1 %v1342_v10  ;;  %214 = vmatprep.mubr.bf16.mxu1 %v1438_v2 }
   0xc   :  { %192 = vmatprep.subr.bf16.mxu1 %v1347_v11  ;;  %1250 = vmatmul.mubr.msk.bf16.vlgmr.msra.gmra.mxu0 %vm93_vm0, %v223_v17 }
   0xf   :  { %193 = vmatpush1.bf16.msra.mxu1 %v1345_v14 }
  0x10   :  { %194 = vmatprep.subr.bf16.mxu1 %v1353_v15 }
  0x13   :  { %195 = vmatpush1.bf16.msra.mxu1 %v1351_v18 }
  0x14   :  { %20 = vsyncpa [#allocation3], 0  ;;  %196 = vmatprep.subr.bf16.mxu1 %v1359_v19  ;;  %v59_v22 = vpack.c.bf16 %v55_v21, %v55_v21  ;;  %vm178_vm1 = vcmask 523264   ;;  %v294_v26 = vlaneseq  ;;  %v1605_v34 = vld [vmem:[%s1891_s12] sm:$0xff]  ;;  %s1439_s16 = smov 64   ;;  %s1440_s18 = smov 32  }
  0x15   :  { %v58_v46 = vld [vmem:[%s1882_s3] sm:$0x3]  ;;  %v1360_v53 = vld [vmem:[%s1889_s10 + $0x18] sm:$0xff]   ;;  %v1441_v54 = vmov 0.0   ;;  %vm1442_vm2 = vmmov 0   ;;  %v1361_v55 = vld [vmem:[%s1889_s10 + $0x10] sm:$0xff]  }
  0x16   :  { %v1597_v30 = vshrl.u32 %v294_v26, 7  ;;  %1284 = vmatprep.subr.bf16.mxu0 %v1441_v54  ;;  %1288 = vmatprep.mubr.msk.bf16.mxu0 %vm1442_vm2, %v1441_v54  ;;  %v1364_v56 = vld [vmem:[%s1890_s11 + $0x34] ss:$8 sps:$4 sm:$0xff]   ;;  %s1443_s24 = smov 96   ;;  %v1368_v62 = vld [vmem:[%s1889_s10 + $0x8] sm:$0xff]   ;;  %v1369_v63 = vld [vmem:[%s1889_s10] sm:$0xff]  }
  0x17   :  { %197 = vmatpush1.bf16.msra.mxu1 %v1357_v20  ;;  %1285 = vmatpush3.bf16.msra.mxu0 %v1360_v53  ;;  %v1362_v1 = vld [vmem:[%s1890_s11 + $0x30] ss:$8 sps:$4 sm:$0xff]   ;;  %v1367_v3 = vld [vmem:[%s1890_s11 + $0x24] ss:$8 sps:$4 sm:$0xff]   ;;  %v1365_v5 = vld [vmem:[%s1890_s11 + $0x20] ss:$8 sps:$4 sm:$0xff]  }
  0x18   :  { %v1600_v33 = vsub.s32 0, %v1597_v30  ;;  %1292 = vmatprep.subr.bf16.mxu1 %v1441_v54  ;;  %1286 = vmatprep.subr.bf16.mxu0 %v1441_v54  ;;  %v1372_v6 = vld [vmem:[%s1890_s11 + $0x14] ss:$8 sps:$4 sm:$0xff]   ;;  %v1662_v10 = vld [vmem:[%s1886_s7] sm:$0x3]  ;;  %v1665_v11 = vsub.s32 1, %v1597_v30 }
  0x19   :  { %v1370_v14 = vld [vmem:[%s1890_s11 + $0x10] ss:$8 sps:$4 sm:$0xff]   ;;  %v1375_v15 = vld [vmem:[%s1890_s11 + $0x4] ss:$8 sps:$4 sm:$0xff]   ;;  %v1373_v17 = vld [vmem:[%s1890_s11] ss:$8 sps:$4 sm:$0xff]  }
  0x1a   :  { %1245 = vmatmul.mubr.msk.bf16.vlgmr.msra.gmra.mxu1 %vm178_vm1, %v59_v22  ;;  %v297_v37 = vrot.slane %v1605_v34, %v1600_v33  ;;  %v496_v12 = vrot.slane %v1662_v10, %v1600_v33  ;;  %v503_v13 = vrot.slane %v1662_v10, %v1665_v11  ;;  %vm541_vm3 = vcmask 1041409   ;;  %s1454_s25 = smov 16   ;;  %s1455_s28 = smov [#allocation2]  }
  0x1b   :  { %1296 = vmatprep.mubr.msk.bf16.mxu1 %vm1442_vm2, %v1441_v54  ;;  %1287 = vmatpush3.bf16.msra.mxu0 %v1361_v55  ;;  %v52_v55 = vld [vmem:[%s1884_s5 + $0x8] sm:$0xff]  ;;  %vm544_vm4 = vcmask 58368   ;;  %vm1086_vm5 = vcmask 1043459   ;;  %vm1088_vm6 = vcmask 1045509   ;;  %vm1090_vm7 = vcmask 1047559   ;;  %s1220_s29 = sshll.u32 %s1455_s28, 4  ;;  %s1221_s29 = int_to_ptr.vmem [resolvable:$true] %s1220_s29 }
  0x1c   :  { %731 = vmatprep.subr.bf16.mxu0 %v1364_v56  ;;  %1293 = vmatpush3.bf16.msra.mxu1 %v1368_v62  ;;  %vm940_vm8 = vcmask 1041408   ;;  %vm1200_vm14 = vcmask 123968   ;;  %s1416_s0 = scalar_lea.vmem %s1221_s29, 32  ;;  %p1421_p1 = scmp.lt.s32.totalorder %s1221_s29, %s1221_s29 }
  0x1d   :  { %1294 = vmatprep.subr.bf16.mxu1 %v1441_v54  ;;  %p1417_p0 = scmp.ne.s32.totalorder %s1221_s29, %s1416_s0  ;;  %p1422_p2 = scmp.lt.s32.totalorder %s1416_s0, %s1416_s0 }
  0x1f   :  { %p1423_p3 = por %p1422_p2, %p1421_p1 }
  0x20   :  { %1295 = vmatpush3.bf16.msra.mxu1 %v1369_v63 }
  0x21   :  { %792 = vmatprep.subr.bf16.mxu1 %v1372_v6  ;;  %p1424_p4 = pnand %p1423_p3, %p1417_p0 }
  0xca   :  { %v131_v23 = vpop.f32.mrf.mxu1 }
  0xcc   :  { %v133_v24 = vpop.f32.mrf.mxu1  ;;  %v285_v28 = vpop.f32.mrf.mxu0 }
  0xce   :  { %v135_v25 = vpop.f32.mrf.mxu1  ;;  %v287_v29 = vpop.f32.mrf.mxu0 }
  0xd0   :  { %v136_v27 = vpop.f32.mrf.mxu1  ;;  %v289_v31 = vpop.f32.mrf.mxu0 }
  0xd1   :  { %v1444_v27 = vmov 1966171168   ;;  %v456_v31 = vrot.slane %v1605_v34, %v1665_v11 }
  0xd2   :  { %v290_v32 = vpop.f32.mrf.mxu0 }
  0xda   :  { %v216_v35 = vpop.f32.mrf.mxu1 }
  0xdb   :  { %v217_v36 = vadd.f32 %v216_v35, %v131_v23 }
  0xdc   :  { %v218_v38 = vpop.f32.mrf.mxu1 }
  0xdd   :  { %v292_v39 = vadd.f32 %v285_v28, %v217_v36  ;;  %v219_v40 = vadd.f32 %v218_v38, %v133_v24  ;;  %v460_v28 = vunpack.c.l.s4 %v1444_v27 }
  0xde   :  { %v220_v41 = vpop.f32.mrf.mxu1 }
  0xdf   :  { %v298_v42 = vadd.f32 %v297_v37, %v292_v39  ;;  %v1609_v43 = vadd.f32 %v287_v29, %v219_v40  ;;  %v461_v29 = vunpack.c.0.s8 %v460_v28  ;;  %v509_v37 = vsub.s32 2, %v1597_v30 }
  0xe0   :  { %v221_v44 = vpop.f32.mrf.mxu1 }
  0xe1   :  { %1388 = vtanh.f32 %v298_v42  ;;  %v1251_v47 = vmul.f32 -1.442695, %v298_v42  ;;  %v464_v36 = vsub.s32 %v461_v29, %v1597_v30  ;;  %v510_v42 = vrot.slane %v1605_v34, %v509_v37 }
  0xe3   :  { %1390 = vpow2.f32 %v1251_v47 }
  0xee   :  { %v1389_v45 = vpop.eup %1388 }
  0xef   :  { %312 = vrot.lane.b32.xlu0 %v1389_v45, %s1439_s16 }
  0xf0   :  { %v1391_v48 = vpop.eup %1390 }
  0xf1   :  { %v302_v49 = vadd.f32 1.0, %v1391_v48 }
  0xf3   :  { %307 = vrot.lane.b32.xlu0 %v58_v46, %s1440_s18  ;;  %1392 = vrcp.f32 %v302_v49  ;;  %v51_v49 = vld [vmem:[%s1884_s5] sm:$0xff] }
 0x100   :  { %v1393_v50 = vpop.eup %1392 }
 0x161   :  { %v313_v51 = vpop.permute.xlu0 %312 }
 0x162   :  { %v315_v52 = vmul.f32 %v1393_v50, %v313_v51 }
 0x164   :  { %317 = vrot.lane.b32.xlu1 %v315_v52, %s1440_s18 }
 0x165   :  { %v308_v57 = vpop.permute.xlu0 %307 }
 0x166   :  { %v310_v58 = vmul.f32 %v1393_v50, %v308_v57 }
 0x1d6   :  { %v318_v59 = vpop.permute.xlu1 %317 }
 0x1d7   :  { %v1626_v60 = vadd.f32 %v318_v59, %v310_v58 }
 0x1d9   :  { %1394 = vtanh.f32 %v1626_v60  ;;  %v332_v61 = vpack.c.bf16 %v1626_v60, %v1626_v60 }
 0x1db   :  { %338 = vrot.lane.b32.xlu0 %v332_v61, %s1443_s24 }
 0x1df   :  { %498 = vbcast.lane.b32.xlu0 %v496_v12, 256 }
 0x1e6   :  { %v1395_v0 = vpop.eup %1394 }
 0x1e7   :  { %323 = vrot.lane.b32.xlu1 %v1395_v0, %s1439_s16 }
 0x24d   :  { %v339_v4 = vpop.permute.xlu0 %338 }
 0x24e   :  { %1289 = vmatmul.mubr.msk.bf16.vlgmr.msra.gmra.mxu0 %vm93_vm0, %v339_v4 }
 0x24f   :  { %732 = vmatpush1.bf16.msra.mxu0 %v1362_v1  ;;  %751 = vmatprep.mubr.bf16.mxu0 %v1438_v2  ;;  %v519_v1 = vsub.s32 3, %v1597_v30 }
 0x250   :  { %733 = vmatprep.subr.bf16.mxu0 %v1367_v3 }
 0x251   :  { %v499_v45 = vpop.permute.xlu0 %498  ;;  %v520_v3 = vrot.slane %v1605_v34, %v519_v1 }
 0x252   :  { %v511_v52 = vmul.f32 %v510_v42, %v499_v45 }
 0x253   :  { %734 = vmatpush1.bf16.msra.mxu0 %v1365_v5 }
 0x256   :  { %1262 = vmatmul.mubr.msk.bf16.vlgmr.msra.gmra.mxu0 %vm93_vm0, %v339_v4 }
 0x257   :  { %912 = vmatprep.mubr.bf16.mxu0 %v1438_v2 }
 0x259   :  { %v324_v7 = vpop.permute.xlu1 %323 }
 0x25a   :  { %v1654_v8 = vmul.f32 %v1393_v50, %v324_v7 }
 0x25c   :  { %v327_v9 = vpack.c.bf16 %v1654_v8, %v1654_v8 }
 0x25e   :  { %396 = vrot.lane.b32.xlu1 %v327_v9, %s1440_s18 }
 0x262   :  { %505 = vbcast.lane.b32.xlu1 %v503_v13, 256  ;;  %v1709_v13 = vand.u32 127, %v294_v26 }
 0x2d0   :  { %v397_v16 = vpop.permute.xlu1 %396 }
 0x2d1   :  { %1297 = vmatmul.mubr.msk.bf16.vlgmr.msra.gmra.mxu1 %vm93_vm0, %v397_v16 }
 0x2d2   :  { %793 = vmatpush1.bf16.msra.mxu1 %v1370_v14  ;;  %812 = vmatprep.mubr.bf16.mxu1 %v1438_v2  ;;  %v1713_v14 = vsub.s32 %v1709_v13, %v1597_v30 }
 0x2d3   :  { %794 = vmatprep.subr.bf16.mxu1 %v1375_v15 }
 0x2d4   :  { %v506_v50 = vpop.permute.xlu1 %505 }
 0x2d5   :  { %v512_v58 = vmul.f32 %v510_v42, %v506_v50 }
 0x2d6   :  { %795 = vmatpush1.bf16.msra.mxu1 %v1373_v17 }
 0x2d9   :  { %1267 = vmatmul.mubr.msk.bf16.vlgmr.msra.gmra.mxu1 %vm93_vm0, %v397_v16 }
 0x30e   :  { %v389_v18 = vpop.f32.mrf.mxu0 }
 0x310   :  { %v1290_v19 = vpop.f32.mrf.mxu0 }
 0x312   :  { %v392_v20 = vpop.f32.mrf.mxu0 }
 0x314   :  { %v1291_v21 = vpop.f32.mrf.mxu0 }
 0x316   :  { %v1683_v22 = vpop.f32.mrf.mxu0 }
 0x318   :  { %v1685_v23 = vpop.f32.mrf.mxu0 }
 0x31a   :  { %v757_v24 = vpop.f32.mrf.mxu0 }
 0x31c   :  { %v758_v25 = vpop.f32.mrf.mxu0 }
 0x391   :  { %v447_v32 = vpop.f32.mrf.mxu1 }
 0x392   :  { %v448_v35 = vadd.f32 %v447_v32, %v389_v18 }
 0x393   :  { %v1298_v38 = vpop.f32.mrf.mxu1 }
 0x394   :  { %v457_v39 = vadd.f32 %v456_v31, %v448_v35  ;;  %v53_v35 = vld [vmem:[%s1885_s6] sm:$0x3] }
 0x395   :  { %v450_v40 = vpop.f32.mrf.mxu1  ;;  %v611_v37 = vrot.slane %v53_v35, %v1665_v11 }
 0x396   :  { %v465_v41 = vrot.slane %v457_v39, %v464_v36 }
 0x397   :  { %v1299_v44 = vpop.f32.mrf.mxu1 }
 0x398   :  { %v466_v46 = vcombine.high %v465_v41, %v465_v41  ;;  %v473_v47 = vrot.slane %v465_v41, %v464_v36 }
 0x399   :  { %v1692_v48 = vpop.f32.mrf.mxu1 }
 0x39a   :  { %v484_v51 = vrot.slane %v473_v47, %v1600_v33  ;;  %v480_v53 = vrot.slane %v466_v46, %v464_v36  ;;  %v604_v36 = vrot.slane %v53_v35, %v1600_v33  ;;  %v1445_v35 = vmov 1983009808  }
 0x39b   :  { %v1698_v54 = vpop.f32.mrf.mxu1 }
 0x39c   :  { %v491_v56 = vadd.f32 %v484_v51, %v51_v49  ;;  %v488_v57 = vrot.slane %v480_v53, %v1600_v33 }
 0x39d   :  { %v818_v59 = vpop.f32.mrf.mxu1 }
 0x39e   :  { %v513_v61 = vadd.f32 %v511_v52, %v491_v56  ;;  %v492_v62 = vadd.f32 %v488_v57, %v52_v55 }
 0x39f   :  { %v819_v63 = vpop.f32.mrf.mxu1 }
 0x3a0   :  { %1396 = vtanh.f32 %v513_v61  ;;  %v514_v0 = vadd.f32 %v512_v58, %v492_v62 }
 0x3a2   :  { %1398 = vtanh.f32 %v514_v0 }
 0x3ad   :  { %v1397_v4 = vpop.eup %1396 }
 0x3ae   :  { %v521_v5 = vmul.f32 %v1397_v4, %v520_v3 }
 0x3af   :  { %v1399_v6 = vpop.eup %1398 }
 0x3b0   :  { %v523_v7 = vsel %vm178_vm1, %v521_v5, 0.0  ;;  %v522_v9 = vmul.f32 %v1399_v6, %v520_v3 }
 0x3b1   :  { %524 = vadd.xlane.f32.xlu0 %v523_v7  ;;  %v1378_v7 = vld [vmem:[%s1890_s11 + $0x74] ss:$8 sps:$4 sm:$0xff]  }
 0x3b2   :  { %v526_v12 = vsel %vm178_vm1, %v522_v9, 0.0  ;;  %v1376_v9 = vld [vmem:[%s1890_s11 + $0x70] ss:$8 sps:$4 sm:$0xff]   ;;  %888 = vmatprep.subr.bf16.mxu0 %v1378_v7 }
 0x3b3   :  { %527 = vadd.xlane.f32.xlu1 %v526_v12  ;;  %889 = vmatpush1.bf16.msra.mxu0 %v1376_v9  ;;  %v1384_v12 = vld [vmem:[%s1890_s11 + $0x54] ss:$8 sps:$4 sm:$0xff]   ;;  %v817_v9 = vadd.f32 %v1698_v54, %v1685_v23  ;;  %v965_v23 = vld [vmem:[%s1887_s8] sm:$0x3]  ;;  %s1453_s8 = smov 8  }
 0x43a   :  { %v525_v15 = vpop.xlane.xlu0 %524 }
 0x43b   :  { %v536_v17 = vrot.slane %v525_v15, %v1713_v14 }
 0x43c   :  { %v528_v16 = vpop.xlane.xlu1 %527 }
 0x43d   :  { %v540_v18 = vrot.slane %v528_v16, %v1713_v14 }
 0x43f   :  { %v542_v19 = vsel %vm541_vm3, %v540_v18, %v536_v17  ;;  %v1385_v17 = vld [vmem:[%s1890_s11 + $0x40] ss:$8 sps:$4 sm:$0xff]  }
 0x440   :  { %v545_v20 = vsel %vm544_vm4, %v542_v19, -inf  ;;  %v49_v18 = vld [vmem:[%s1883_s4] sm:$0xff] }
 0x441   :  { %546 = vmax.xlane.f32.xlu0 %v545_v20 }
 0x4ca   :  { %v547_v21 = vpop.xlane.xlu0 %546 }
 0x4cb   :  { %v552_v26 = vrot.slane %v547_v21, %v1600_v33  ;;  %v556_v24 = vrot.slane %v547_v21, %v1665_v11  ;;  %v50_v21 = vld [vmem:[%s1883_s4 + $0x8] sm:$0xff] }
 0x4cd   :  { %v559_v25 = vsub.f32 %v525_v15, %v552_v26  ;;  %v560_v27 = vsub.f32 %v528_v16, %v556_v24  ;;  %v1382_v15 = vld [vmem:[%s1890_s11 + $0x50] ss:$8 sps:$4 sm:$0xff]   ;;  %v1387_v16 = vld [vmem:[%s1890_s11 + $0x44] ss:$8 sps:$4 sm:$0xff]  }
 0x4cf   :  { %v561_v28 = vmul.f32 1.442695, %v559_v25  ;;  %v563_v29 = vmul.f32 1.442695, %v560_v27 }
 0x4d1   :  { %1400 = vpow2.f32 %v561_v28 }
 0x4d2   :  { %1402 = vpow2.f32 %v563_v29 }
 0x4de   :  { %v1401_v31 = vpop.eup %1400 }
 0x4df   :  { %v1403_v32 = vpop.eup %1402  ;;  %568 = vperm.xlu0 %1318, %v1401_v31  }
 0x4e0   :  { %571 = vperm.xlu1 %1319, %v1403_v32  }
 0x4e3   :  { %606 = vbcast.lane.b32.xlu0 %v604_v36, 256  ;;  %v1051_v36 = vunpack.c.l.s4 %v1445_v35 }
 0x4e7   :  { %613 = vbcast.lane.b32.xlu0 %v611_v37, 256 }
 0x55a   :  { %v569_v38 = vpop.permute.xlu0 %568 }
 0x55b   :  { %v572_v39 = vpop.permute.xlu1 %571  ;;  %v576_v40 = vrot.slane %v569_v38, %v1713_v14 }
 0x55c   :  { %v580_v41 = vrot.slane %v572_v39, %v1713_v14 }
 0x55e   :  { %v581_v42 = vsel %vm541_vm3, %v580_v41, %v576_v40  ;;  %v607_v46 = vpop.permute.xlu0 %606  ;;  %v1052_v41 = vunpack.c.0.s8 %v1051_v36 }
 0x55f   :  { %v583_v44 = vsel %vm544_vm4, %v581_v42, 0.0 }
 0x560   :  { %584 = vadd.xlane.f32.xlu1 %v583_v44 }
 0x562   :  { %v614_v51 = vpop.permute.xlu0 %613 }
 0x5e9   :  { %v585_v45 = vpop.xlane.xlu1 %584 }
 0x5ea   :  { %1404 = vrcp.f32 %v585_v45 }
 0x5f7   :  { %v1405_v47 = vpop.eup %1404 }
 0x5f8   :  { %v591_v49 = vrot.slane %v1405_v47, %v1600_v33  ;;  %v595_v50 = vrot.slane %v1405_v47, %v1665_v11 }
 0x5fa   :  { %v598_v52 = vmul.f32 %v1401_v31, %v591_v49  ;;  %v599_v53 = vmul.f32 %v1403_v32, %v595_v50 }
 0x5fc   :  { %v617_v55 = vmul.f32 %v607_v46, %v598_v52  ;;  %v618_v56 = vmul.f32 %v614_v51, %v599_v53  ;;  %v1783_v46 = vsub.s32 %v1052_v41, %v1597_v30 }
 0x5fe   :  { %622 = vperm.xlu0 %1318, %v617_v55   ;;  %625 = vperm.xlu1 %1319, %v618_v56  }
 0x679   :  { %v626_v57 = vpop.permute.xlu1 %625  ;;  %v623_v58 = vpop.permute.xlu0 %622 }
 0x67a   :  { %v634_v59 = vrot.slane %v626_v57, %v1713_v14  ;;  %v630_v61 = vrot.slane %v623_v58, %v1713_v14 }
 0x67c   :  { %v635_v62 = vsel %vm541_vm3, %v634_v59, %v630_v61 }
 0x67d   :  { %v637_v63 = vsel %vm544_vm4, %v635_v62, 0.0 }
 0x67e   :  { %638 = vadd.xlane.f32.xlu0 %v637_v63 }
 0x707   :  { %v639_v0 = vpop.xlane.xlu0 %638 }
 0x708   :  { %1406 = vrcp.f32 %v639_v0  ;;  %v925_v0 = vsub.s32 5, %v1597_v30 }
 0x715   :  { %v1407_v1 = vpop.eup %1406 }
 0x716   :  { %v645_v3 = vrot.slane %v1407_v1, %v1600_v33  ;;  %v649_v5 = vrot.slane %v1407_v1, %v1665_v11  ;;  %v1381_v33 = vld [vmem:[%s1890_s11 + $0x64] ss:$8 sps:$4 sm:$0xff]   ;;  %v1379_v11 = vld [vmem:[%s1890_s11 + $0x60] ss:$8 sps:$4 sm:$0xff]   ;;  %v815_v1 = vadd.f32 %v1692_v48, %v1683_v22 }
 0x717   :  { %890 = vmatprep.subr.bf16.mxu0 %v1381_v33 }
 0x718   :  { %v1737_v4 = vmul.f32 %v645_v3, %v617_v55  ;;  %v1741_v6 = vmul.f32 %v649_v5, %v618_v56  ;;  %891 = vmatpush1.bf16.msra.mxu0 %v1379_v11  ;;  %v931_v3 = vsub.s32 4, %v1597_v30  ;;  %v926_v5 = vrot.slane %v1605_v34, %v925_v0 }
 0x719   :  { %892 = vmatprep.subr.bf16.mxu0 %v1384_v12 }
 0x71a   :  { %656 = vperm.xlu1 %1319, %v1737_v4  }
 0x71c   :  { %893 = vmatpush1.bf16.msra.mxu0 %v1382_v15  ;;  %v932_v15 = vrot.slane %v1605_v34, %v931_v3  ;;  %v1446_v34 = vmov 1  }
 0x71d   :  { %894 = vmatprep.subr.bf16.mxu0 %v1387_v16 }
 0x71e   :  { %661 = vperm.xlu1 %1319, %v1741_v6  }
 0x720   :  { %895 = vmatpush1.bf16.msra.mxu0 %v1385_v17 }
 0x795   :  { %v1771_v19 = vpop.permute.xlu1 %656 }
 0x796   :  { %v664_v20 = vmul.f32 %v1771_v19, %v49_v18 }
 0x798   :  { %v666_v26 = vsel %vm178_vm1, %v664_v20, 0.0 }
 0x799   :  { %v667_v24 = vrot.slane %v666_v26, 4  ;;  %v1778_v25 = vpop.permute.xlu1 %661 }
 0x79a   :  { %v665_v27 = vmul.f32 %v1778_v25, %v50_v21 }
 0x79b   :  { %v668_v28 = vadd.f32 %v667_v24, %v666_v26  ;;  %v1447_v26 = vmov 2  }
 0x79c   :  { %v673_v29 = vsel %vm178_vm1, %v665_v27, 0.0 }
 0x79d   :  { %v669_v31 = vrot.slane %v668_v28, 2  ;;  %v674_v32 = vrot.slane %v673_v29, 4 }
 0x79f   :  { %v670_v37 = vadd.f32 %v669_v31, %v668_v28  ;;  %v675_v38 = vadd.f32 %v674_v32, %v673_v29  ;;  %v1449_v28 = vmov 4   ;;  %v1450_v29 = vmov 5  }
 0x7a0   :  { %v1451_v31 = vmov 6   ;;  %v1452_v32 = vmov 7  }
 0x7a1   :  { %v671_v39 = vrot.slane %v670_v37, 1  ;;  %v676_v40 = vrot.slane %v675_v38, 2 }
 0x7a3   :  { %v672_v42 = vadd.f32 %v671_v39, %v670_v37  ;;  %v677_v44 = vadd.f32 %v676_v40, %v675_v38  ;;  %v1114_v38 = vcombine.high %v1741_v6, %v1741_v6  ;;  %v1121_v40 = vrot.slane %v1741_v6, %v1783_v46 }
 0x7a5   :  { %v678_v45 = vrot.slane %v677_v44, 1  ;;  %v821_v47 = vpack.c.bf16 %v672_v42, %v672_v42  ;;  %v1072_v53 = vrot.slane %v672_v42, %v1783_v46  ;;  %v1128_v39 = vrot.slane %v1114_v38, %v1783_v46 }
 0x7a7   :  { %v679_v49 = vadd.f32 %v678_v45, %v677_v44  ;;  %v833_v52 = vunpack.c.l.b16 %v821_v47  ;;  %v1130_v41 = vcombine.high %v1128_v39, %v1128_v39  ;;  %v1129_v44 = vcombine.high %v1121_v40, %v1121_v40 }
 0x7a8   :  { %v687_v45 = vrot.slane %v1778_v25, %v1713_v14 }
 0x7a9   :  { %v822_v50 = vpack.c.bf16 %v679_v49, %v679_v49  ;;  %v1079_v51 = vrot.slane %v679_v49, %v1783_v46  ;;  %v1149_v49 = vcombine.low %v1128_v39, %v1130_v41 }
 0x7ab   :  { %v834_v55 = vunpack.c.l.b16 %v822_v50  ;;  %v1084_v56 = vrot.slane %v1079_v51, 7  ;;  %v683_v50 = vrot.slane %v1771_v19, %v1713_v14  ;;  %v1148_v51 = vcombine.low %v1121_v40, %v1129_v44 }
 0x7ac   :  { %v1104_v19 = vrot.slane %v1737_v4, %v1783_v46 }
 0x7ad   :  { %v835_v57 = vsel %vm541_vm3, %v834_v55, %v833_v52  ;;  %v1085_v58 = vsel %vm541_vm3, %v1084_v56, %v1072_v53  ;;  %v688_v53 = vsel %vm541_vm3, %v687_v45, %v683_v50  ;;  %v1163_v55 = vrot.slane %v1149_v49, %v1783_v46 }
 0x7ae   :  { %v836_v59 = vpack.c.b16 %v835_v57, %v835_v57  ;;  %v1087_v61 = vsel %vm1086_vm5, %v1084_v56, %v1085_v58  ;;  %v1156_v25 = vrot.slane %v1148_v51, %v1783_v46  ;;  %vm1095_vm5 = vcmask 1041920  }
 0x7af   :  { %v1089_v62 = vsel %vm1088_vm6, %v1084_v56, %v1087_v61  ;;  %v1112_v61 = vcombine.high %v1104_v19, %v1104_v19 }
 0x7b0   :  { %1276 = vmatmul.mubr.msk.bf16.vlgmr.msra.gmra.mxu0 %vm178_vm1, %v836_v59  ;;  %v1790_v63 = vsel %vm1090_vm7, %v1084_v56, %v1089_v62  ;;  %v1097_v56 = vcombine.high %v1737_v4, %v1737_v4  ;;  %v1164_v57 = vcombine.low %v1156_v25, %v1163_v55  ;;  %v690_v4 = vadd.f32 %v688_v53, %v1662_v10 }
 0x7b1   :  { %v1131_v0 = vcombine.low %v1104_v19, %v1112_v61  ;;  %vm1212_vm1 = vcmask 132224  }
 0x7b2   :  { %v1111_v58 = vrot.slane %v1097_v56, %v1783_v46 }
 0x7b3   :  { %v1139_v3 = vrot.slane %v1131_v0, %v1783_v46 }
 0x7b4   :  { %v1113_v59 = vcombine.high %v1111_v58, %v1111_v58 }
 0x7b6   :  { %v1132_v62 = vcombine.low %v1111_v58, %v1113_v59 }
 0x870   :  { %v914_v7 = vpop.f32.mrf.mxu0 }
 0x871   :  { %v921_v33 = vadd.f32 %v914_v7, %v815_v1  ;;  %v1146_v1 = vrot.slane %v1132_v62, %v1783_v46  ;;  %v1196_v7 = vrot.slane %v690_v4, %v1783_v46 }
 0x872   :  { %v916_v11 = vpop.f32.mrf.mxu0 }
 0x873   :  { %v922_v12 = vadd.f32 %v916_v11, %v817_v9  ;;  %v927_v16 = vadd.f32 %v926_v5, %v921_v33  ;;  %v1147_v5 = vcombine.low %v1139_v3, %v1146_v1 }
 0x874   :  { %v918_v17 = vpop.f32.mrf.mxu0 }
 0x875   :  { %v928_v18 = vadd.f32 %v922_v12, %v1609_v43  ;;  %v941_v22 = vsel %vm940_vm8, %v927_v16, -inf  ;;  %v1448_v43 = vmov 3  }
 0x876   :  { %942 = vmax.xlane.f32.xlu1 %v941_v22  ;;  %v919_v30 = vpop.f32.mrf.mxu0 }
 0x877   :  { %v933_v48 = vadd.f32 %v932_v15, %v928_v18 }
 0x879   :  { %v1277_v20 = vmul.f32 -1.442695, %v933_v48 }
 0x87b   :  { %1408 = vpow2.f32 %v1277_v20 }
 0x887   :  { %967 = vperm.xlu1 %1319, %v965_v23  }
 0x888   :  { %v1409_v54 = vpop.eup %1408 }
 0x889   :  { %v937_v21 = vadd.f32 1.0, %v1409_v54 }
 0x88b   :  { %1410 = vrcp.f32 %v937_v21  ;;  %1320 = vset.pattern.permute.xlu1 %v1446_v34 }
 0x88c   :  { %978 = vperm.xlu1 %1320, %v965_v23  }
 0x890   :  { %1321 = vset.pattern.permute.xlu1 %v1447_v26 }
 0x891   :  { %988 = vperm.xlu1 %1321, %v965_v23  }
 0x895   :  { %1322 = vset.pattern.permute.xlu1 %v1448_v43 }
 0x896   :  { %998 = vperm.xlu1 %1322, %v965_v23  }
 0x898   :  { %v1805_v24 = vpop.eup %1410 }
 0x899   :  { %v952_v27 = vsub.f32 1.0, %v1805_v24  ;;  %v1208_v9 = vrot.slane %v1805_v24, %v1783_v46 }
 0x89a   :  { %1323 = vset.pattern.permute.xlu1 %v1449_v28 }
 0x89b   :  { %955 = vperm.xlu0 %1318, %v952_v27   ;;  %1008 = vperm.xlu1 %1323, %v965_v23  }
 0x89f   :  { %1324 = vset.pattern.permute.xlu1 %v1450_v29  ;;  %1328 = vset.pattern.permute.xlu0 %v1446_v34 }
 0x8a0   :  { %1018 = vperm.xlu1 %1324, %v965_v23  }
 0x8a4   :  { %1325 = vset.pattern.permute.xlu1 %v1451_v31 }
 0x8a5   :  { %1028 = vperm.xlu1 %1325, %v965_v23  }
 0x8a9   :  { %1326 = vset.pattern.permute.xlu1 %v1452_v32 }
 0x8aa   :  { %1038 = vperm.xlu1 %1326, %v965_v23  }
 0x8ae   :  { %1327 = vset.pattern.permute.xlu1 %v1438_v2 }
 0x8ff   :  { %v943_v35 = vpop.xlane.xlu1 %942 }
 0x900   :  { %v944_v36 = vsub.f32 %v927_v16, %v943_v35 }
 0x902   :  { %v945_v37 = vmul.f32 1.442695, %v944_v36 }
 0x903   :  { %v968_v10 = vpop.permute.xlu1 %967 }
 0x904   :  { %1412 = vpow2.f32 %v945_v37  ;;  %vm969_vm9 = vcmp.eq.s32.totalorder %v968_v10, %v1709_v13 }
 0x907   :  { %v979_v33 = vpop.permute.xlu1 %978 }
 0x908   :  { %vm980_vm10 = vcmp.eq.s32.totalorder %v979_v33, %v1709_v13 }
 0x90c   :  { %v989_v11 = vpop.permute.xlu1 %988 }
 0x90d   :  { %vm990_vm11 = vcmp.eq.s32.totalorder %v989_v11, %v1709_v13 }
 0x911   :  { %v1814_v42 = vpop.eup %1412  ;;  %v999_v12 = vpop.permute.xlu1 %998 }
 0x912   :  { %v947_v47 = vsel %vm940_vm8, %v1814_v42, 0.0  ;;  %vm1000_vm12 = vcmp.eq.s32.totalorder %v999_v12, %v1709_v13 }
 0x913   :  { %948 = vadd.xlane.f32.xlu0 %v947_v47 }
 0x916   :  { %v956_v52 = vpop.permute.xlu0 %955  ;;  %v1009_v15 = vpop.permute.xlu1 %1008 }
 0x917   :  { %v958_v6 = vmul.f32 %v956_v52, %v688_v53  ;;  %vm1010_vm13 = vcmp.eq.s32.totalorder %v1009_v15, %v1709_v13 }
 0x919   :  { %972 = vperm.xlu1 %1327, %v958_v6  }
 0x91b   :  { %v1019_v16 = vpop.permute.xlu1 %1018 }
 0x91c   :  { %vm1020_vm15 = vcmp.eq.s32.totalorder %v1019_v16, %v1709_v13 }
 0x91d   :  { %1169 = vperm.xlu1 %1327, %v1164_v57  }
 0x920   :  { %v1029_v17 = vpop.permute.xlu1 %1028 }
 0x921   :  { %1330 = vset.pattern.permute.xlu1 %v1447_v26  ;;  %vm1030_vm0 = vcmp.eq.s32.totalorder %v1029_v17, %v1709_v13 }
 0x922   :  { %992 = vperm.xlu1 %1330, %v958_v6  }
 0x925   :  { %v1039_v18 = vpop.permute.xlu1 %1038 }
 0x926   :  { %1331 = vset.pattern.permute.xlu1 %v1448_v43  ;;  %vm1040_vm2 = vcmp.eq.s32.totalorder %v1039_v18, %v1709_v13 }
 0x927   :  { %1002 = vperm.xlu1 %1331, %v958_v6  }
 0x929   :  { %982 = vperm.xlu0 %1328, %v958_v6  }
 0x92b   :  { %1332 = vset.pattern.permute.xlu1 %v1449_v28 }
 0x92c   :  { %1012 = vperm.xlu1 %1332, %v958_v6  }
 0x92d   :  { %1329 = vset.pattern.permute.xlu0 %v1438_v2  ;;  %v1056_v2 = vrot.slane %v1654_v8, %v1783_v46 }
 0x92e   :  { %1166 = vperm.xlu0 %1329, %v1147_v5  }
 0x930   :  { %1333 = vset.pattern.permute.xlu1 %v1450_v29 }
 0x931   :  { %1022 = vperm.xlu1 %1333, %v958_v6  }
 0x932   :  { %961 = vperm.xlu0 %1329, %v1805_v24  }
 0x935   :  { %1334 = vset.pattern.permute.xlu1 %v1451_v31 }
 0x936   :  { %1032 = vperm.xlu1 %1334, %v958_v6   ;;  %1197 = vrot.lane.b32.xlu0 %v1196_v7, %s1453_s8 }
 0x93a   :  { %1335 = vset.pattern.permute.xlu1 %v1452_v32  ;;  %1209 = vrot.lane.b32.xlu0 %v1208_v9, %s1454_s25 }
 0x93b   :  { %1042 = vperm.xlu1 %1335, %v958_v6  }
 0x93f   :  { %1057 = vrot.lane.b32.xlu1 %v1056_v2, %s1440_s18 }
 0x943   :  { %1092 = vrot.lane.b32.xlu1 %v1790_v63, %s1439_s16 }
 0x994   :  { %v973_v22 = vpop.permute.xlu1 %972 }
 0x995   :  { %v975_v63 = vsel %vm969_vm9, %v973_v22, 0.0 }
 0x998   :  { %v1170_v30 = vpop.permute.xlu1 %1169 }
 0x999   :  { %v1178_v27 = vrot.slane %v1170_v30, %v1713_v14 }
 0x99c   :  { %v949_v20 = vpop.xlane.xlu0 %948 }
 0x99d   :  { %v993_v48 = vpop.permute.xlu1 %992  ;;  %1414 = vrcp.f32 %v949_v20 }
 0x99e   :  { %v995_v34 = vsel %vm990_vm11, %v993_v48, 0.0 }
 0x9a2   :  { %v1003_v23 = vpop.permute.xlu1 %1002 }
 0x9a3   :  { %v1005_v29 = vsel %vm1000_vm12, %v1003_v23, 0.0 }
 0x9a4   :  { %v983_v8 = vpop.permute.xlu0 %982 }
 0x9a5   :  { %v985_v54 = vsel %vm980_vm10, %v983_v8, 0.0 }
 0x9a6   :  { %v986_v21 = vadd.f32 %v985_v54, %v975_v63 }
 0x9a7   :  { %v1013_v26 = vpop.permute.xlu1 %1012 }
 0x9a8   :  { %v996_v43 = vadd.f32 %v995_v34, %v986_v21  ;;  %v1015_v38 = vsel %vm1010_vm13, %v1013_v26, 0.0 }
 0x9a9   :  { %v1167_v24 = vpop.permute.xlu0 %1166 }
 0x9aa   :  { %v1174_v28 = vrot.slane %v1167_v24, %v1713_v14  ;;  %v1006_v31 = vadd.f32 %v1005_v29, %v996_v43  ;;  %v1415_v39 = vpop.eup %1414 }
 0x9ab   :  { %v951_v47 = vmul.f32 %v1415_v39, %v1814_v42 }
 0x9ac   :  { %v1179_v32 = vsel %vm541_vm3, %v1178_v27, %v1174_v28  ;;  %v1023_v35 = vpop.permute.xlu1 %1022  ;;  %v1016_v14 = vadd.f32 %v1015_v38, %v1006_v31  ;;  %vm1060_vm3 = vcmask 254976  }
 0x9ad   :  { %v962_v36 = vpop.permute.xlu0 %961  ;;  %v1186_v37 = vrot.slane %v1179_v32, %v1783_v46  ;;  %v1025_v40 = vsel %vm1020_vm15, %v1023_v35, 0.0 }
 0x9ae   :  { %v1026_v45 = vadd.f32 %v1025_v40, %v1016_v14  ;;  %v964_v53 = vmul.f32 %v962_v36, %v951_v47 }
 0x9af   :  { %1188 = vst.msk [vmem:[%s1893_s14 + $0x2] sm:$0x3] %vm544_vm4, %v1186_v37  ;;  %vm1062_vm4 = vcmask 517376  }
 0x9b1   :  { %v1033_v41 = vpop.permute.xlu1 %1032  ;;  %v1198_v44 = vpop.permute.xlu0 %1197 }
 0x9b2   :  { %1201 = vst.msk [vmem:[%s1893_s14 + $0x2] sm:$0x3] %vm1200_vm14, %v1198_v44  ;;  %v1035_v46 = vsel %vm1030_vm0, %v1033_v41, 0.0 }
 0x9b3   :  { %v1036_v50 = vadd.f32 %v1035_v46, %v1026_v45 }
 0x9b5   :  { %v1210_v49 = vpop.permute.xlu0 %1209 }
 0x9b6   :  { %1213 = vst.msk [vmem:[%s1893_s14 + $0x2] sm:$0x3] %vm1212_vm1, %v1210_v49  ;;  %v1043_v51 = vpop.permute.xlu1 %1042 }
 0x9b7   :  { %v1045_v52 = vsel %vm1040_vm2, %v1043_v51, 0.0 }
 0x9b8   :  { %v1046_v6 = vadd.f32 %v1045_v52, %v1036_v50 }
 0x9ba   :  { %v1058_v55 = vpop.permute.xlu1 %1057  ;;  %v1047_v56 = vadd.f32 %v1046_v6, %v964_v53 }
 0x9bb   :  { %1061 = vst.msk [vmem:[%s1893_s14] sm:$0x3] %vm1060_vm3, %v1058_v55 }
 0x9bc   :  { %1063 = vst.msk [vmem:[%s1893_s14] sm:$0x3] %vm1062_vm4, %v1626_v60  ;;  %1048 = vst [vmem:[#allocation2] sm:$0x3] %v1047_v56 }
 0x9bd   :  { %1427 = shalt.err (!%p1424_p4)
}
 0x9be   :  { %1223 = dma.vmem_to_hbm [thread:$0]  %s1221_s29, 32, %s1892_s13, [#allocation3]   ;;  %v1093_v13 = vpop.permute.xlu1 %1092 }
 0x9bf   :  { %1096 = vst.msk [vmem:[%s1893_s14] sm:$0x3] %vm1095_vm5, %v1093_v13 }
 0x9c0   :  { %1436 = dma.done.wait [#allocation3], 32  }
 0x9c1   :  { %1437 = vsyncadd [#allocation3], 4294967264 }
 0x9c2   :  { %1231 = vsyncpa [#allocation3], 1 }

</bundles_post_ra>
